<compile_context>
chip_gen: v6e
topology: v6e:2x2x1
jax: 0.10.0
libtpu: 0.0.40
codegen_flags: <defaults>
</compile_context>

<pallas_src>
import jax
import jax.numpy as jnp
from jax.experimental import pallas as pl
from jax.experimental.pallas import tpu as pltpu

K_PAD = 896          # 784 padded up to 7 * 128 lanes
N_CLASSES = 10
N_OUT_PAD = 128      # lane-dense output width
NEG_BIG = -1e30      # pad-class bias -> exp underflows to exactly 0


def _round_up(x, m):
    return ((x + m - 1) // m) * m


def _mlp_kernel(x_ref, w1_ref, b1_ref, w2_ref, b2_ref, w3_ref, b3_ref, o_ref):
    # x_ref: (TB, 896) bf16; weights bf16; biases f32; o_ref: (TB, 128) f32.
    x = x_ref[...]

    # fc1 + ReLU  (MXU bf16 -> f32 accumulate; elementwise in f32)
    h1 = jnp.dot(x, w1_ref[...], preferred_element_type=jnp.float32)        # (TB, 128)
    h1 = jnp.maximum(h1 + b1_ref[...], 0.0)

    # fc2 + ReLU
    h2 = jnp.dot(h1.astype(jnp.bfloat16), w2_ref[...],
                 preferred_element_type=jnp.float32)                        # (TB, 64)
    h2 = jnp.maximum(h2 + b2_ref[...], 0.0)

    # fc3 (padded to 128 classes; pad lanes carry bias -1e30 -> softmax weight 0)
    logits = jnp.dot(h2.astype(jnp.bfloat16), w3_ref[...],
                     preferred_element_type=jnp.float32)                    # (TB, 128)
    logits = logits + b3_ref[...]

    # softmax over classes (dim=1); divide moved to the EUP via approx reciprocal
    m = jnp.max(logits, axis=1, keepdims=True)
    e = jnp.exp(logits - m)
    inv = pl.reciprocal(jnp.sum(e, axis=1, keepdims=True), approx=True)
    o_ref[...] = e * inv


def _prepare_params(params):
    """Pad/cast PyTorch-shaped (in, out) params for the kernel."""
    w1, b1, w2, b2, w3, b3 = params
    w1p = jnp.pad(w1, ((0, K_PAD - 784), (0, 0))).astype(jnp.bfloat16)          # (896, 128)
    w2p = w2.astype(jnp.bfloat16)                                               # (128, 64)
    w3p = jnp.pad(w3, ((0, 0), (0, N_OUT_PAD - N_CLASSES))).astype(jnp.bfloat16)  # (64, 128)
    b3p = jnp.pad(b3, ((0, 0), (0, N_OUT_PAD - N_CLASSES)),
                  constant_values=NEG_BIG).astype(jnp.float32)                  # (1, 128)
    return w1p, b1.astype(jnp.float32), w2p, b2.astype(jnp.float32), w3p, b3p


def feedforward_nn(x_img, params, *, max_tb=512):
    """x_img: (B, 1, 28, 28) float32 (NCHW). Returns (B, 10) softmax probabilities."""
    B = x_img.shape[0]
    w1p, b1, w2p, b2, w3p, b3p = _prepare_params(params)

    # x.view(-1, 784) -> bf16, pad K 784->896, pad batch to a multiple of the tile.
    x = x_img.reshape(B, 784).astype(jnp.bfloat16)
    x = jnp.pad(x, ((0, 0), (0, K_PAD - 784)))
    tb = min(max_tb, _round_up(B, 8))            # batch tile: <=512 rows, multiple of 8 sublanes
    b_pad = _round_up(B, tb)
    if b_pad != B:
        x = jnp.pad(x, ((0, b_pad - B), (0, 0)))
    n_steps = pl.cdiv(b_pad, tb)

    flops = 2 * b_pad * (K_PAD * 128 + 128 * 64 + 64 * N_OUT_PAD)
    bytes_accessed = (b_pad * K_PAD * 2                      # x (bf16)
                      + (K_PAD * 128 + 128 * 64 + 64 * N_OUT_PAD) * 2   # weights (bf16)
                      + (128 + 64 + N_OUT_PAD) * 4           # biases (f32)
                      + b_pad * N_OUT_PAD * 4)               # output (f32)
    cost = pl.CostEstimate(flops=flops,
                           transcendentals=b_pad * (N_OUT_PAD + 1),
                           bytes_accessed=bytes_accessed)

    resident = lambda a: pl.BlockSpec(a.shape, lambda i: (0,) * a.ndim)  # VMEM-resident across steps
    out_pad = pl.pallas_call(
        _mlp_kernel,
        out_shape=jax.ShapeDtypeStruct((b_pad, N_OUT_PAD), jnp.float32),
        grid=(n_steps,),
        in_specs=[
            pl.BlockSpec((tb, K_PAD), lambda i: (i, 0)),   # x tile, pipelined over batch
            resident(w1p), resident(b1),
            resident(w2p), resident(b2),
            resident(w3p), resident(b3p),
        ],
        out_specs=pl.BlockSpec((tb, N_OUT_PAD), lambda i: (i, 0)),
        compiler_params=pltpu.CompilerParams(
            dimension_semantics=("parallel",),
            vmem_limit_bytes=32 << 20,
        ),
        cost_estimate=cost,
    )(x, w1p, b1, w2p, b2, w3p, b3p)

    return out_pad[:B, :N_CLASSES]


def init_params(key):
    """PyTorch-equivalent shapes: fc1(784,128), fc2(128,64), fc3(64,10), stored as (in, out)."""
    ks = jax.random.split(key, 6)

    def uniform(k, shape, fan_in):
        bound = 1.0 / jnp.sqrt(fan_in)
        return jax.random.uniform(k, shape, jnp.float32, -bound, bound)

    w1 = uniform(ks[0], (784, 128), 784.0)
    b1 = uniform(ks[1], (1, 128), 784.0)
    w2 = uniform(ks[2], (128, 64), 128.0)
    b2 = uniform(ks[3], (1, 64), 128.0)
    w3 = uniform(ks[4], (64, 10), 64.0)
    b3 = uniform(ks[5], (1, 10), 64.0)
    return (w1, b1, w2, b2, w3, b3)


def _reference(x_img, params):
    """Pure-JAX reference using the same bf16-input / f32-accumulate matmul math."""
    w1, b1, w2, b2, w3, b3 = params
    x = x_img.reshape(x_img.shape[0], 784).astype(jnp.bfloat16)
    h1 = jnp.maximum(
        jnp.dot(x, w1.astype(jnp.bfloat16), preferred_element_type=jnp.float32) + b1, 0.0)
    h2 = jnp.maximum(
        jnp.dot(h1.astype(jnp.bfloat16), w2.astype(jnp.bfloat16),
                preferred_element_type=jnp.float32) + b2, 0.0)
    logits = jnp.dot(h2.astype(jnp.bfloat16), w3.astype(jnp.bfloat16),
                     preferred_element_type=jnp.float32) + b3
    return jax.nn.softmax(logits, axis=1)


if __name__ == "__main__":
    key = jax.random.PRNGKey(0)
    k_param, k_x = jax.random.split(key)
    params = init_params(k_param)

    # Small MNIST-like batch: (B=8, C=1, H=28, W=28), NCHW.
    x_img = jax.random.normal(k_x, (8, 1, 28, 28), dtype=jnp.float32)

    probs = feedforward_nn(x_img, params)
    probs = jax.block_until_ready(probs)

    ref = _reference(x_img, params)
    assert probs.shape == (8, 10)
    # Tolerances loosened vs the original 1e-5 because of pl.reciprocal(approx=True) in the softmax.
    assert jnp.allclose(jnp.sum(probs, axis=1), 1.0, atol=5e-3)
    assert jnp.allclose(probs, ref, atol=5e-3), "mismatch vs pure-JAX reference"

    print("KERNEL_OK")
</pallas_src>

<mosaic_0001>
module attributes {stable_mosaic.version = 11 : i64} {
  func.func @_mlp_kernel(%arg0: i32, %arg1: memref<8x896xbf16, #tpu.memory_space<vmem>>, %arg2: memref<896x128xbf16, #tpu.memory_space<vmem>>, %arg3: memref<1x128xf32, #tpu.memory_space<vmem>>, %arg4: memref<128x64xbf16, #tpu.memory_space<vmem>>, %arg5: memref<1x64xf32, #tpu.memory_space<vmem>>, %arg6: memref<64x128xbf16, #tpu.memory_space<vmem>>, %arg7: memref<1x128xf32, #tpu.memory_space<vmem>>, %arg8: memref<8x128xf32, #tpu.memory_space<vmem>>) attributes {dimension_semantics = [#tpu.dimension_semantics<parallel>], iteration_bounds = array<i64: 1>, scalar_prefetch = 0 : i64, scratch_operands = 0 : i64, tpu.core_type = #tpu.core_type<tc>, window_params = [{transform_indices = @transform_0, window_bounds = array<i64: 8, 896>}, {pipeline_mode = #tpu.pipeline_mode<synchronous>, transform_indices = @transform_1, window_bounds = array<i64: 896, 128>}, {pipeline_mode = #tpu.pipeline_mode<synchronous>, transform_indices = @transform_2, window_bounds = array<i64: 1, 128>}, {pipeline_mode = #tpu.pipeline_mode<synchronous>, transform_indices = @transform_3, window_bounds = array<i64: 128, 64>}, {pipeline_mode = #tpu.pipeline_mode<synchronous>, transform_indices = @transform_4, window_bounds = array<i64: 1, 64>}, {pipeline_mode = #tpu.pipeline_mode<synchronous>, transform_indices = @transform_5, window_bounds = array<i64: 64, 128>}, {pipeline_mode = #tpu.pipeline_mode<synchronous>, transform_indices = @transform_6, window_bounds = array<i64: 1, 128>}, {transform_indices = @transform_7, window_bounds = array<i64: 8, 128>}]} {
    %c0 = arith.constant 0 : index
    %c0_0 = arith.constant 0 : index
    %0 = vector.load %arg1[%c0, %c0_0] : memref<8x896xbf16, #tpu.memory_space<vmem>>, vector<8x896xbf16>
    %c0_1 = arith.constant 0 : index
    %c0_2 = arith.constant 0 : index
    %1 = vector.load %arg2[%c0_1, %c0_2] : memref<896x128xbf16, #tpu.memory_space<vmem>>, vector<896x128xbf16>
    %cst = arith.constant dense<0.000000e+00> : vector<8x128xf32>
    %2 = tpu.matmul %0, %1, %cst {dimension_numbers = #tpu.dot_dimension_numbers<[1], [0], [0], [1], [0, 0, 1, 1], [], []>} : vector<8x896xbf16>, vector<896x128xbf16>, vector<8x128xf32> -> vector<8x128xf32>
    %c0_3 = arith.constant 0 : index
    %c0_4 = arith.constant 0 : index
    %3 = vector.load %arg3[%c0_3, %c0_4] : memref<1x128xf32, #tpu.memory_space<vmem>>, vector<1x128xf32>
    %4 = vector.broadcast %3 : vector<1x128xf32> to vector<8x128xf32>
    %5 = arith.addf %2, %4 : vector<8x128xf32>
    %cst_5 = arith.constant 0.000000e+00 : f32
    %6 = vector.broadcast %cst_5 : f32 to vector<8x128xf32>
    %7 = arith.maximumf %5, %6 : vector<8x128xf32>
    %8 = arith.truncf %7 : vector<8x128xf32> to vector<8x128xbf16>
    %c0_6 = arith.constant 0 : index
    %c0_7 = arith.constant 0 : index
    %9 = vector.load %arg4[%c0_6, %c0_7] : memref<128x64xbf16, #tpu.memory_space<vmem>>, vector<128x64xbf16>
    %cst_8 = arith.constant dense<0.000000e+00> : vector<8x64xf32>
    %10 = tpu.matmul %8, %9, %cst_8 {dimension_numbers = #tpu.dot_dimension_numbers<[1], [0], [0], [1], [0, 0, 1, 1], [], []>} : vector<8x128xbf16>, vector<128x64xbf16>, vector<8x64xf32> -> vector<8x64xf32>
    %c0_9 = arith.constant 0 : index
    %c0_10 = arith.constant 0 : index
    %11 = vector.load %arg5[%c0_9, %c0_10] : memref<1x64xf32, #tpu.memory_space<vmem>>, vector<1x64xf32>
    %12 = vector.broadcast %11 : vector<1x64xf32> to vector<8x64xf32>
    %13 = arith.addf %10, %12 : vector<8x64xf32>
    %cst_11 = arith.constant 0.000000e+00 : f32
    %14 = vector.broadcast %cst_11 : f32 to vector<8x64xf32>
    %15 = arith.maximumf %13, %14 : vector<8x64xf32>
    %16 = arith.truncf %15 : vector<8x64xf32> to vector<8x64xbf16>
    %c0_12 = arith.constant 0 : index
    %c0_13 = arith.constant 0 : index
    %17 = vector.load %arg6[%c0_12, %c0_13] : memref<64x128xbf16, #tpu.memory_space<vmem>>, vector<64x128xbf16>
    %cst_14 = arith.constant dense<0.000000e+00> : vector<8x128xf32>
    %18 = tpu.matmul %16, %17, %cst_14 {dimension_numbers = #tpu.dot_dimension_numbers<[1], [0], [0], [1], [0, 0, 1, 1], [], []>} : vector<8x64xbf16>, vector<64x128xbf16>, vector<8x128xf32> -> vector<8x128xf32>
    %c0_15 = arith.constant 0 : index
    %c0_16 = arith.constant 0 : index
    %19 = vector.load %arg7[%c0_15, %c0_16] : memref<1x128xf32, #tpu.memory_space<vmem>>, vector<1x128xf32>
    %20 = vector.broadcast %19 : vector<1x128xf32> to vector<8x128xf32>
    %21 = arith.addf %18, %20 : vector<8x128xf32>
    %cst_17 = arith.constant dense<0xFF800000> : vector<8xf32>
    %22 = vector.multi_reduction <maximumf>, %21, %cst_17 [1] : vector<8x128xf32> to vector<8xf32>
    %23 = vector.shape_cast %22 : vector<8xf32> to vector<8x1xf32>
    %24 = vector.broadcast %23 : vector<8x1xf32> to vector<8x128xf32>
    %25 = arith.subf %21, %24 : vector<8x128xf32>
    %26 = math.exp %25 : vector<8x128xf32>
    %cst_18 = arith.constant dense<0.000000e+00> : vector<8xf32>
    %27 = vector.multi_reduction <add>, %26, %cst_18 [1] : vector<8x128xf32> to vector<8xf32>
    %28 = vector.shape_cast %27 : vector<8xf32> to vector<8x1xf32>
    %29 = tpu.reciprocal %28 {approx = true} : vector<8x1xf32> -> vector<8x1xf32>
    %30 = vector.broadcast %29 : vector<8x1xf32> to vector<8x128xf32>
    %31 = arith.mulf %26, %30 : vector<8x128xf32>
    %c0_19 = arith.constant 0 : index
    %c0_20 = arith.constant 0 : index
    %32 = vector.load %arg8[%c0_19, %c0_20] : memref<8x128xf32, #tpu.memory_space<vmem>>, vector<8x128xf32>
    tpu.vector_store %arg8[%c0_19, %c0_20], %31 {strides = array<i32>} : memref<8x128xf32, #tpu.memory_space<vmem>>, vector<8x128xf32>,
    return
  }
  func.func @transform_0(%arg0: i32) -> (i32, i32) {
    %c0_i32 = arith.constant 0 : i32
    %c0_i32_0 = arith.constant 0 : i32
    return %arg0, %c0_i32 : i32, i32
  }
  func.func @transform_1(%arg0: i32) -> (i32, i32) {
    %c0_i32 = arith.constant 0 : i32
    %c0_i32_0 = arith.constant 0 : i32
    %c0_i32_1 = arith.constant 0 : i32
    return %c0_i32, %c0_i32_0 : i32, i32
  }
  func.func @transform_2(%arg0: i32) -> (i32, i32) {
    %c0_i32 = arith.constant 0 : i32
    %c0_i32_0 = arith.constant 0 : i32
    %c0_i32_1 = arith.constant 0 : i32
    return %c0_i32, %c0_i32_0 : i32, i32
  }
  func.func @transform_3(%arg0: i32) -> (i32, i32) {
    %c0_i32 = arith.constant 0 : i32
    %c0_i32_0 = arith.constant 0 : i32
    %c0_i32_1 = arith.constant 0 : i32
    return %c0_i32, %c0_i32_0 : i32, i32
  }
  func.func @transform_4(%arg0: i32) -> (i32, i32) {
    %c0_i32 = arith.constant 0 : i32
    %c0_i32_0 = arith.constant 0 : i32
    %c0_i32_1 = arith.constant 0 : i32
    return %c0_i32, %c0_i32_0 : i32, i32
  }
  func.func @transform_5(%arg0: i32) -> (i32, i32) {
    %c0_i32 = arith.constant 0 : i32
    %c0_i32_0 = arith.constant 0 : i32
    %c0_i32_1 = arith.constant 0 : i32
    return %c0_i32, %c0_i32_0 : i32, i32
  }
  func.func @transform_6(%arg0: i32) -> (i32, i32) {
    %c0_i32 = arith.constant 0 : i32
    %c0_i32_0 = arith.constant 0 : i32
    %c0_i32_1 = arith.constant 0 : i32
    return %c0_i32, %c0_i32_0 : i32, i32
  }
  func.func @transform_7(%arg0: i32) -> (i32, i32) {
    %c0_i32 = arith.constant 0 : i32
    %c0_i32_0 = arith.constant 0 : i32
    return %arg0, %c0_i32 : i32, i32
  }
}

</mosaic_0001>

<bundles_post_ra>
// kernel: tpu_custom_call.1
= control target key start
LH: loop header
LB: loop body
LE: loop exit
PB: predicated region body
PF: predicated region fallthrough
CT: control target
= control target key end

     0   :  { %12 = vsyncpa [#allocation3], 0  ;;  %s1393_s0 = inlined_call_operand.vmem [shape: bf16[8,896], index: 0, kind: input, shape index: {}]   ;;  %s1394_s1 = inlined_call_operand.hbm [shape: bf16[896,128], index: 1, kind: input, shape index: {}]   ;;  %s1395_s2 = inlined_call_operand.vmem [shape: f32[1,128], index: 2, kind: input, shape index: {}]   ;;  %s1396_s3 = inlined_call_operand.vmem [shape: bf16[128,64], index: 3, kind: input, shape index: {}]   ;;  %s1397_s4 = inlined_call_operand.vmem [shape: f32[1,64], index: 4, kind: input, shape index: {}]   ;;  %s1398_s5 = inlined_call_operand.vmem [shape: bf16[64,128], index: 5, kind: input, shape index: {}]   ;;  %s1399_s6 = inlined_call_operand.vmem [shape: f32[1,128], index: 6, kind: input, shape index: {}]   ;;  %s1400_s7 = inlined_call_operand.hbm [shape: f32[8,128], index: 7, kind: output, shape index: {}]  }
   0x1   :  { %13 = vsyncpa [#allocation4], 0  ;;  %s1258_s24 = smov [#allocation2]  }
   0x2   :  { %s21_s25 = sshll.u32 %s1258_s24, 4  ;;  %s22_s25 = int_to_ptr.vmem [resolvable:$true] %s21_s25 }
   0x3   :  { %s1222_s26 = scalar_lea.vmem %s22_s25, 7168  ;;  %p1227_p1 = scmp.lt.s32.totalorder %s22_s25, %s22_s25 }
   0x4   :  { %p1223_p0 = scmp.ne.s32.totalorder %s22_s25, %s1222_s26  ;;  %p1228_p2 = scmp.lt.s32.totalorder %s1222_s26, %s1222_s26 }
   0x6   :  { %p1229_p3 = por %p1228_p2, %p1227_p1 }
   0x8   :  { %p1230_p4 = pnand %p1229_p3, %p1223_p0 }
   0xa   :  { %1233 = shalt.err (!%p1230_p4)
}
   0xb   :  { %s1259_s27 = smov 64   ;;  %s1260_s28 = smov 4  }
   0xc   :  { %27 = dma.hbm_to_vmem [thread:$0]  %s1394_s1, 7168, %s22_s25, [#allocation3], %s1259_s27, %s1259_s27, %s1260_s28  }
   0xd   :  { %1254 = dma.done.wait [#allocation3], 7168  }
   0xe   :  { %1255 = vsyncadd [#allocation3], 4294960128  ;;  %v1135_v0 = vld [vmem:[#allocation2 + $0x78] sm:$0xff]   ;;  %v1139_v4 = vld [vmem:[#allocation2 + $0x70] sm:$0xff]   ;;  %v1261_v39 = vmov 0.0   ;;  %vm1262_vm0 = vmmov 0  }
   0xf   :  { %v1136_v1 = vld [vmem:[#allocation2 + $0xf8] sm:$0xff]   ;;  %988 = vmatprep.subr.bf16.mxu0 %v1135_v0  ;;  %v1140_v5 = vld [vmem:[#allocation2 + $0xf0] sm:$0xff]   ;;  %v1143_v8 = vld [vmem:[#allocation2 + $0x68] sm:$0xff]   ;;  %vm840_vm1 = vcmask 523264  }
  0x10   :  { %v1137_v2 = vld [vmem:[#allocation2 + $0x38] sm:$0xff]   ;;  %1010 = vmatprep.subr.bf16.mxu1 %v1136_v1  ;;  %v1141_v6 = vld [vmem:[#allocation2 + $0x30] sm:$0xff]   ;;  %v1144_v9 = vld [vmem:[#allocation2 + $0xe8] sm:$0xff]  }
  0x11   :  { %v1138_v3 = vld [vmem:[#allocation2 + $0xb8] sm:$0xff]   ;;  %989 = vmatpush3.bf16.msra.mxu0 %v1137_v2  ;;  %v1142_v7 = vld [vmem:[#allocation2 + $0xb0] sm:$0xff]   ;;  %v1145_v10 = vld [vmem:[#allocation2 + $0x28] sm:$0xff]  }
  0x12   :  { %1011 = vmatpush3.bf16.msra.mxu1 %v1138_v3  ;;  %990 = vmatprep.subr.bf16.mxu0 %v1139_v4  ;;  %v1146_v11 = vld [vmem:[#allocation2 + $0xa8] sm:$0xff]   ;;  %v1147_v12 = vld [vmem:[#allocation2 + $0x60] sm:$0xff]   ;;  %v1151_v16 = vld [vmem:[#allocation2 + $0x58] sm:$0xff]  }
  0x13   :  { %1012 = vmatprep.subr.bf16.mxu1 %v1140_v5  ;;  %v1148_v13 = vld [vmem:[#allocation2 + $0xe0] sm:$0xff]   ;;  %v1152_v17 = vld [vmem:[#allocation2 + $0xd8] sm:$0xff]   ;;  %v1155_v20 = vld [vmem:[#allocation2 + $0x50] sm:$0xff]  }
  0x14   :  { %v1149_v14 = vld [vmem:[#allocation2 + $0x20] sm:$0xff]   ;;  %v1153_v18 = vld [vmem:[#allocation2 + $0x18] sm:$0xff]   ;;  %v1156_v21 = vld [vmem:[#allocation2 + $0xd0] sm:$0xff]  }
  0x15   :  { %991 = vmatpush3.bf16.msra.mxu0 %v1141_v6  ;;  %v1150_v15 = vld [vmem:[#allocation2 + $0xa0] sm:$0xff]   ;;  %v1154_v19 = vld [vmem:[#allocation2 + $0x98] sm:$0xff]   ;;  %v1157_v22 = vld [vmem:[#allocation2 + $0x10] sm:$0xff]  }
  0x16   :  { %1013 = vmatpush3.bf16.msra.mxu1 %v1142_v7  ;;  %992 = vmatprep.subr.bf16.mxu0 %v1143_v8  ;;  %v1158_v23 = vld [vmem:[#allocation2 + $0x90] sm:$0xff]   ;;  %v1159_v24 = vld [vmem:[#allocation2 + $0x48] sm:$0xff]   ;;  %v1163_v28 = vld [vmem:[#allocation2 + $0x40] sm:$0xff]  }
  0x17   :  { %1014 = vmatprep.subr.bf16.mxu1 %v1144_v9  ;;  %v1160_v25 = vld [vmem:[#allocation2 + $0xc8] sm:$0xff]   ;;  %v1164_v29 = vld [vmem:[#allocation2 + $0xc0] sm:$0xff]   ;;  %v1171_v38 = vld [vmem:[#allocation2 + $0x178] sm:$0xff]  }
  0x18   :  { %v1161_v26 = vld [vmem:[#allocation2 + $0x8] sm:$0xff]   ;;  %v1165_v30 = vld [vmem:[#allocation2] sm:$0xff]   ;;  %v1172_v40 = vld [vmem:[#allocation2 + $0x138] sm:$0xff]  }
  0x19   :  { %993 = vmatpush3.bf16.msra.mxu0 %v1145_v10  ;;  %v1162_v27 = vld [vmem:[#allocation2 + $0x88] sm:$0xff]   ;;  %v1166_v31 = vld [vmem:[#allocation2 + $0x80] sm:$0xff]   ;;  %v1173_v41 = vld [vmem:[#allocation2 + $0x1b8] sm:$0xff]  }
  0x1a   :  { %1015 = vmatpush3.bf16.msra.mxu1 %v1146_v11  ;;  %994 = vmatprep.subr.bf16.mxu0 %v1147_v12  ;;  %v42_v32 = vld [vmem:[%s1393_s0] sm:$0xff]  ;;  %v43_v33 = vld [vmem:[%s1393_s0 + $0x8] sm:$0xff]  ;;  %v1174_v42 = vld [vmem:[#allocation2 + $0x170] sm:$0xff]  }
  0x1b   :  { %1016 = vmatprep.subr.bf16.mxu1 %v1148_v13  ;;  %v910_v34 = vcombine.low %v42_v32, %v42_v32  ;;  %v911_v35 = vcombine.high %v42_v32, %v42_v32  ;;  %v912_v36 = vcombine.low %v43_v33, %v43_v33  ;;  %v913_v37 = vcombine.high %v43_v33, %v43_v33  ;;  %v1175_v43 = vld [vmem:[#allocation2 + $0x130] sm:$0xff]   ;;  %v1177_v45 = vld [vmem:[#allocation2 + $0x168] sm:$0xff]   ;;  %v1180_v48 = vld [vmem:[#allocation2 + $0x160] sm:$0xff]  }
  0x1c   :  { %v1176_v44 = vld [vmem:[#allocation2 + $0x1b0] sm:$0xff]   ;;  %v1178_v46 = vld [vmem:[#allocation2 + $0x128] sm:$0xff]   ;;  %v1181_v49 = vld [vmem:[#allocation2 + $0x120] sm:$0xff]  }
  0x1d   :  { %995 = vmatpush3.bf16.msra.mxu0 %v1149_v14  ;;  %558 = vmatprep.mubr.bf16.mxu0 %v911_v35  ;;  %v1179_v47 = vld [vmem:[#allocation2 + $0x1a8] sm:$0xff]   ;;  %v1182_v50 = vld [vmem:[#allocation2 + $0x1a0] sm:$0xff]   ;;  %v1183_v51 = vld [vmem:[#allocation2 + $0x158] sm:$0xff]  }
  0x1e   :  { %1017 = vmatpush3.bf16.msra.mxu1 %v1150_v15  ;;  %996 = vmatprep.subr.bf16.mxu0 %v1151_v16  ;;  %v1184_v52 = vld [vmem:[#allocation2 + $0x118] sm:$0xff]   ;;  %v1186_v54 = vld [vmem:[#allocation2 + $0x150] sm:$0xff]   ;;  %v1189_v57 = vld [vmem:[#allocation2 + $0x148] sm:$0xff]  }
  0x1f   :  { %1018 = vmatprep.subr.bf16.mxu1 %v1152_v17  ;;  %598 = vmatprep.mubr.bf16.mxu1 %v913_v37  ;;  %v1185_v53 = vld [vmem:[#allocation2 + $0x198] sm:$0xff]   ;;  %v1187_v55 = vld [vmem:[#allocation2 + $0x110] sm:$0xff]   ;;  %v1190_v58 = vld [vmem:[#allocation2 + $0x108] sm:$0xff]  }
  0x20   :  { %v1188_v56 = vld [vmem:[#allocation2 + $0x190] sm:$0xff]   ;;  %v1191_v59 = vld [vmem:[#allocation2 + $0x188] sm:$0xff]   ;;  %v1192_v61 = vld [vmem:[#allocation2 + $0x140] sm:$0xff]  }
  0x21   :  { %997 = vmatpush3.bf16.msra.mxu0 %v1153_v18  ;;  %v44_v60 = vld [vmem:[%s1393_s0 + $0x10] sm:$0xff]  ;;  %v1193_v63 = vld [vmem:[#allocation2 + $0x100] sm:$0xff]   ;;  %v1197_v2 = vld [vmem:[%s1393_s0 + $0x18] ss:$0 sps:$4 sm:$0xff]  }
  0x22   :  { %1019 = vmatpush3.bf16.msra.mxu1 %v1154_v19  ;;  %998 = vmatprep.subr.bf16.mxu0 %v1155_v20  ;;  %v915_v62 = vcombine.high %v44_v60, %v44_v60  ;;  %v1194_v0 = vld [vmem:[#allocation2 + $0x180] sm:$0xff]   ;;  %v914_v1 = vcombine.low %v44_v60, %v44_v60  ;;  %v1198_v3 = vld [vmem:[%s1396_s3 + $0x38] sm:$0xff]   ;;  %v1199_v4 = vld [vmem:[%s1396_s3 + $0x30] sm:$0xff]  }
  0x23   :  { %1020 = vmatprep.subr.bf16.mxu1 %v1156_v21  ;;  %v1200_v5 = vld [vmem:[%s1396_s3 + $0x28] sm:$0xff]   ;;  %v1201_v6 = vld [vmem:[%s1396_s3 + $0x20] sm:$0xff]   ;;  %v1202_v7 = vld [vmem:[%s1396_s3 + $0x18] sm:$0xff]  }
  0x24   :  { %v1203_v8 = vld [vmem:[%s1396_s3 + $0x10] sm:$0xff]   ;;  %v1204_v9 = vld [vmem:[%s1396_s3 + $0x8] sm:$0xff]   ;;  %v1205_v10 = vld [vmem:[%s1396_s3] sm:$0xff]  }
  0x25   :  { %999 = vmatpush3.bf16.msra.mxu0 %v1157_v22  ;;  %v1206_v11 = vld [vmem:[%s1398_s5 + $0x18] sm:$0xff]   ;;  %v1207_v12 = vld [vmem:[%s1398_s5 + $0x10] sm:$0xff]   ;;  %v909_v22 = vld [vmem:[%s1395_s2] ss:$0 sm:$0xff] }
  0x26   :  { %1021 = vmatpush3.bf16.msra.mxu1 %v1158_v23  ;;  %1000 = vmatprep.subr.bf16.mxu0 %v1159_v24 }
  0x27   :  { %1022 = vmatprep.subr.bf16.mxu1 %v1160_v25 }
  0x29   :  { %1001 = vmatpush3.bf16.msra.mxu0 %v1161_v26 }
  0x2a   :  { %1023 = vmatpush3.bf16.msra.mxu1 %v1162_v27  ;;  %1002 = vmatprep.subr.bf16.mxu0 %v1163_v28 }
  0x2b   :  { %1024 = vmatprep.subr.bf16.mxu1 %v1164_v29 }
  0x2d   :  { %1003 = vmatpush3.bf16.msra.mxu0 %v1165_v30 }
  0x2e   :  { %1025 = vmatpush3.bf16.msra.mxu1 %v1166_v31  ;;  %1032 = vmatprep.subr.bf16.mxu0 %v1171_v38 }
  0x2f   :  { %1077 = vmatprep.subr.bf16.mxu1 %v1261_v39 }
  0x30   :  { %559 = vmatmul.mubr.bf16.vlgmr.msra.gmra.mxu0 %v910_v34 }
  0x31   :  { %599 = vmatmul.mubr.bf16.vlgmr.msra.gmra.mxu1 %v912_v36  ;;  %1033 = vmatpush3.bf16.msra.mxu0 %v1172_v40  ;;  %v1208_v40 = vld [vmem:[%s1398_s5 + $0x8] sm:$0xff]  }
  0x32   :  { %1078 = vmatpush3.bf16.msra.mxu1 %v1173_v41  ;;  %1034 = vmatprep.subr.bf16.mxu0 %v1174_v42  ;;  %v1209_v41 = vld [vmem:[%s1398_s5] sm:$0xff]  }
  0x33   :  { %1079 = vmatprep.subr.bf16.mxu1 %v1261_v39  ;;  %1093 = vmatprep.mubr.msk.bf16.mxu1 %vm1262_vm0, %v1261_v39  ;;  %v973_v42 = vld [vmem:[%s1397_s4] ss:$0 sm:$0xff]  ;;  %s1263_s4 = smov [#allocation5]  }
  0x34   :  { %638 = vmatprep.mubr.bf16.mxu0 %v915_v62  ;;  %s900_s5 = sshll.u32 %s1263_s4, 4  ;;  %s901_s5 = int_to_ptr.vmem [resolvable:$true] %s900_s5 }
  0x35   :  { %1035 = vmatpush3.bf16.msra.mxu0 %v1175_v43  ;;  %p1239_p6 = scmp.lt.s32.totalorder %s901_s5, %s901_s5 }
  0x36   :  { %1080 = vmatpush3.bf16.msra.mxu1 %v1176_v44  ;;  %1036 = vmatprep.subr.bf16.mxu0 %v1177_v45 }
  0x37   :  { %1081 = vmatprep.subr.bf16.mxu1 %v1261_v39 }
  0x39   :  { %1037 = vmatpush3.bf16.msra.mxu0 %v1178_v46 }
  0x3a   :  { %1082 = vmatpush3.bf16.msra.mxu1 %v1179_v47  ;;  %1038 = vmatprep.subr.bf16.mxu0 %v1180_v48 }
  0x3b   :  { %1083 = vmatprep.subr.bf16.mxu1 %v1261_v39 }
  0x3d   :  { %1039 = vmatpush3.bf16.msra.mxu0 %v1181_v49 }
  0x3e   :  { %1084 = vmatpush3.bf16.msra.mxu1 %v1182_v50  ;;  %1040 = vmatprep.subr.bf16.mxu0 %v1183_v51 }
  0x3f   :  { %1085 = vmatprep.subr.bf16.mxu1 %v1261_v39 }
  0x41   :  { %1041 = vmatpush3.bf16.msra.mxu0 %v1184_v52 }
  0x42   :  { %1086 = vmatpush3.bf16.msra.mxu1 %v1185_v53  ;;  %1042 = vmatprep.subr.bf16.mxu0 %v1186_v54 }
  0x43   :  { %1087 = vmatprep.subr.bf16.mxu1 %v1261_v39 }
  0x45   :  { %1043 = vmatpush3.bf16.msra.mxu0 %v1187_v55 }
  0x46   :  { %1088 = vmatpush3.bf16.msra.mxu1 %v1188_v56  ;;  %1044 = vmatprep.subr.bf16.mxu0 %v1189_v57 }
  0x47   :  { %1089 = vmatprep.subr.bf16.mxu1 %v1261_v39 }
  0x49   :  { %1045 = vmatpush3.bf16.msra.mxu0 %v1190_v58 }
  0x4a   :  { %1090 = vmatpush3.bf16.msra.mxu1 %v1191_v59  ;;  %1046 = vmatprep.subr.bf16.mxu0 %v1192_v61 }
  0x4b   :  { %1091 = vmatprep.subr.bf16.mxu1 %v1261_v39 }
  0x4d   :  { %1047 = vmatpush3.bf16.msra.mxu0 %v1193_v63 }
  0x4e   :  { %1092 = vmatpush3.bf16.msra.mxu1 %v1194_v0  ;;  %1097 = vmatprep.subr.bf16.mxu0 %v1261_v39 }
  0x4f   :  { %1117 = vmatprep.subr.bf16.mxu1 %v1261_v39 }
  0x50   :  { %639 = vmatmul.mubr.bf16.vlgmr.msra.gmra.mxu0 %v914_v1 }
  0x51   :  { %1094 = vmatmul.mubr.bf16.vlgmr.msra.gmra.mxu1 %v1197_v2  ;;  %1113 = vmatprep.mubr.msk.bf16.mxu0 %vm1262_vm0, %v1261_v39 }
  0x52   :  { %1125 = vmatprep.mubr.msk.bf16.mxu1 %vm1262_vm0, %v1261_v39  ;;  %1098 = vmatpush3.bf16.msra.mxu0 %v1198_v3 }
  0x53   :  { %1099 = vmatprep.subr.bf16.mxu0 %v1261_v39  ;;  %1118 = vmatpush3.bf16.msra.mxu1 %v1206_v11 }
  0x54   :  { %1119 = vmatprep.subr.bf16.mxu1 %v1261_v39 }
  0x56   :  { %1100 = vmatpush3.bf16.msra.mxu0 %v1199_v4 }
  0x57   :  { %1101 = vmatprep.subr.bf16.mxu0 %v1261_v39  ;;  %1120 = vmatpush3.bf16.msra.mxu1 %v1207_v12 }
  0x58   :  { %1121 = vmatprep.subr.bf16.mxu1 %v1261_v39 }
  0x5a   :  { %1102 = vmatpush3.bf16.msra.mxu0 %v1200_v5 }
  0x5b   :  { %1103 = vmatprep.subr.bf16.mxu0 %v1261_v39  ;;  %1122 = vmatpush3.bf16.msra.mxu1 %v1208_v40 }
  0x5c   :  { %1123 = vmatprep.subr.bf16.mxu1 %v1261_v39 }
  0x5e   :  { %1104 = vmatpush3.bf16.msra.mxu0 %v1201_v6 }
  0x5f   :  { %1105 = vmatprep.subr.bf16.mxu0 %v1261_v39  ;;  %1124 = vmatpush3.bf16.msra.mxu1 %v1209_v41 }
  0x62   :  { %1106 = vmatpush3.bf16.msra.mxu0 %v1202_v7 }
  0x63   :  { %1107 = vmatprep.subr.bf16.mxu0 %v1261_v39 }
  0x66   :  { %1108 = vmatpush3.bf16.msra.mxu0 %v1203_v8 }
  0x67   :  { %1109 = vmatprep.subr.bf16.mxu0 %v1261_v39 }
  0x6a   :  { %1110 = vmatpush3.bf16.msra.mxu0 %v1204_v9 }
  0x6b   :  { %1111 = vmatprep.subr.bf16.mxu0 %v1261_v39  ;;  %v982_v39 = vld [vmem:[%s1399_s6] ss:$0 sm:$0xff]  ;;  %s1234_s6 = scalar_lea.vmem %s901_s5, 128 }
  0x6c   :  { %p1235_p5 = scmp.ne.s32.totalorder %s901_s5, %s1234_s6  ;;  %p1240_p7 = scmp.lt.s32.totalorder %s1234_s6, %s1234_s6 }
  0x6e   :  { %1112 = vmatpush3.bf16.msra.mxu0 %v1205_v10  ;;  %p1241_p8 = por %p1240_p7, %p1239_p6 }
  0x70   :  { %p1242_p9 = pnand %p1241_p8, %p1235_p5 }
  0xf0   :  { %v1004_v13 = vpop.f32.mrf.mxu0 }
  0xf1   :  { %v1026_v14 = vpop.f32.mrf.mxu1 }
  0xf2   :  { %v1005_v15 = vpop.f32.mrf.mxu0 }
  0xf3   :  { %v1027_v16 = vpop.f32.mrf.mxu1  ;;  %v1006_v21 = vadd.f32 %v1005_v15, %v1004_v13 }
  0xf4   :  { %v1007_v17 = vpop.f32.mrf.mxu0  ;;  %v1028_v24 = vadd.f32 %v1027_v16, %v1026_v14 }
  0xf5   :  { %v1029_v18 = vpop.f32.mrf.mxu1  ;;  %v561_v23 = vadd.f32 %v1006_v21, %v909_v22 }
  0xf6   :  { %v1008_v19 = vpop.f32.mrf.mxu0 }
  0xf7   :  { %v1030_v20 = vpop.f32.mrf.mxu1  ;;  %v601_v28 = vadd.f32 %v1028_v24, %v561_v23 }
 0x110   :  { %v1048_v25 = vpop.f32.mrf.mxu0 }
 0x111   :  { %v680_v26 = vpop.f32.mrf.mxu1 }
 0x112   :  { %v1049_v27 = vpop.f32.mrf.mxu0 }
 0x113   :  { %v1050_v29 = vadd.f32 %v1049_v27, %v1048_v25  ;;  %v1095_v30 = vpop.f32.mrf.mxu1 }
 0x114   :  { %v1051_v31 = vpop.f32.mrf.mxu0 }
 0x115   :  { %v641_v32 = vadd.f32 %v1050_v29, %v601_v28  ;;  %v683_v33 = vpop.f32.mrf.mxu1 }
 0x116   :  { %v1052_v34 = vpop.f32.mrf.mxu0 }
 0x117   :  { %v681_v35 = vadd.f32 %v680_v26, %v641_v32  ;;  %v1096_v36 = vpop.f32.mrf.mxu1 }
 0x119   :  { %v686_v37 = vmax.f32 %v681_v35, 0.0 }
 0x11b   :  { %v687_v38 = vpack.c.bf16 %v686_v37, %v686_v37 }
 0x11d   :  { %1114 = vmatmul.mubr.bf16.vlgmr.msra.gmra.mxu0 %v687_v38 }
 0x1dd   :  { %v793_v43 = vpop.f32.mrf.mxu0 }
 0x1de   :  { %v794_v44 = vadd.f32 %v973_v42, %v793_v43 }
 0x1df   :  { %v1115_v45 = vpop.f32.mrf.mxu0 }
 0x1e0   :  { %v799_v46 = vmax.f32 %v794_v44, 0.0 }
 0x1e1   :  { %v796_v47 = vpop.f32.mrf.mxu0 }
 0x1e2   :  { %v800_v48 = vpack.c.bf16 %v799_v46, %v799_v46 }
 0x1e3   :  { %v1116_v49 = vpop.f32.mrf.mxu0 }
 0x1e4   :  { %1126 = vmatmul.mubr.msk.bf16.vlgmr.msra.gmra.mxu1 %vm840_vm1, %v800_v48 }
 0x2a4   :  { %v878_v50 = vpop.f32.mrf.mxu1 }
 0x2a5   :  { %v879_v51 = vadd.f32 %v982_v39, %v878_v50 }
 0x2a6   :  { %v1127_v52 = vpop.f32.mrf.mxu1 }
 0x2a7   :  { %884 = vmax.xlane.f32.xlu0 %v879_v51 }
 0x2a8   :  { %v881_v53 = vpop.f32.mrf.mxu1 }
 0x2aa   :  { %v1128_v54 = vpop.f32.mrf.mxu1 }
 0x330   :  { %v885_v55 = vpop.xlane.xlu0 %884 }
 0x331   :  { %v886_v56 = vsub.f32 %v879_v51, %v885_v55 }
 0x333   :  { %v887_v57 = vmul.f32 1.442695, %v886_v56 }
 0x335   :  { %1210 = vpow2.f32 %v887_v57 }
 0x342   :  { %v1211_v58 = vpop.eup %1210 }
 0x343   :  { %889 = vadd.xlane.f32.xlu0 %v1211_v58 }
 0x3cc   :  { %v890_v59 = vpop.xlane.xlu0 %889 }
 0x3cd   :  { %1212 = vrcp.f32 %v890_v59 }
 0x3da   :  { %v1213_v60 = vpop.eup %1212 }
 0x3db   :  { %v892_v61 = vmul.f32 %v1213_v60, %v1211_v58 }
 0x3dd   :  { %893 = vst [vmem:[#allocation5] sm:$0xff] %v892_v61 }
 0x3de   :  { %1245 = shalt.err (!%p1242_p9)
}
 0x3df   :  { %903 = dma.vmem_to_hbm [thread:$0]  %s901_s5, 128, %s1400_s7, [#allocation4]  }
 0x3e0   :  { %1256 = dma.done.wait [#allocation4], 128  }
 0x3e1   :  { %1257 = vsyncadd [#allocation4], 4294967168 }
 0x3e2   :  { %907 = vsyncpa [#allocation3], 1 }
 0x3e3   :  { %908 = vsyncpa [#allocation4], 1 }

</bundles_post_ra>
